<compile_context>
chip_gen: v7x
topology: tpu7x:2x2x1
jax: 0.10.0
libtpu: 0.0.40
codegen_flags: <defaults>
</compile_context>

<pallas_src>
import functools

import jax
import jax.numpy as jnp
from jax.experimental import pallas as pl
from jax.experimental.pallas import tpu as pltpu


def _flash_softmax_attn_kernel(q_ref, k_ref, v_ref, o_ref,
                               q_sc, m_sc, l_sc, acc_sc,
                               *, scale, num_heads, head_dim):
    """One (batch, q-tile) block; grid axis 2 walks the kv tiles sequentially.

    Blocks:
      q_ref, o_ref : (1, tq, H*D)      k_ref, v_ref : (1, tk, H*D)
    Scratch (persistent across the kv axis):
      q_sc  : (H, tq, D)  scaled, head-split q (built once per q tile, reused every kv step)
      m_sc  : (H, tq, 1)  f32 running row max
      l_sc  : (H, tq, 1)  f32 running softmax denominator
      acc_sc: (H, tq, D)  f32 un-normalized output accumulator
    """
    H, D = num_heads, head_dim
    kv = pl.program_id(2)

    @pl.when(kv == 0)
    def _init():
        q = q_ref[0]                              # (tq, H*D), input dtype (no f32 up-cast)
        if scale != 1.0:
            q = q * scale                         # one lane-dense VPU multiply per q tile
        for h in range(H):                        # head-split relayout, done ONCE per q tile
            q_sc[h] = q[:, h * D:(h + 1) * D]
        m_sc[...] = jnp.full_like(m_sc, -jnp.inf)
        l_sc[...] = jnp.zeros_like(l_sc)
        acc_sc[...] = jnp.zeros_like(acc_sc)

    # Head-split k/v for this kv tile: (tk, H*D) -> (H, tk, D).  One relayout per operand per
    # step (equivalent to einshape 'k(hd)->hkd'); all compute below is head-batched.
    k = k_ref[0]
    v = v_ref[0]
    k3 = jnp.stack([k[:, h * D:(h + 1) * D] for h in range(H)], axis=0)   # (H, tk, D)
    v3 = jnp.stack([v[:, h * D:(h + 1) * D] for h in range(H)], axis=0)   # (H, tk, D)
    q3 = q_sc[...]                                                        # (H, tq, D)

    # Head-batched QK^T on the MXU; operands stay in the input dtype, f32 accumulation.
    s = jnp.einsum('hqd,hkd->hqk', q3, k3,
                   preferred_element_type=jnp.float32)                    # (H, tq, tk) f32

    # Online (numerically stable) softmax statistics, batched over heads.
    m_prev = m_sc[...]                                                    # (H, tq, 1)
    m_new = jnp.maximum(m_prev, jnp.max(s, axis=-1, keepdims=True))       # XLU row max
    alpha = jnp.exp(m_prev - m_new)
    p = jnp.exp(s - m_new)                                                # EUP, (H, tq, tk)

    # Row sums on the MXU (p @ ones column) instead of a second XLU cross-lane reduction.
    tk = p.shape[-1]
    ones_col = jnp.ones((H, tk, 1), dtype=p.dtype)
    row_sum = jnp.einsum('hqk,hkd->hqd', p, ones_col,
                         preferred_element_type=jnp.float32)              # (H, tq, 1)
    l_sc[...] = alpha * l_sc[...] + row_sum

    # Head-batched PV matmul; accumulate in f32.
    pv = jnp.einsum('hqk,hkd->hqd', p.astype(v3.dtype), v3,
                    preferred_element_type=jnp.float32)                   # (H, tq, D)
    acc_sc[...] = alpha * acc_sc[...] + pv
    m_sc[...] = m_new

    @pl.when(kv == pl.num_programs(2) - 1)
    def _finalize():
        inv_l = pl.reciprocal(l_sc[...], approx=True)                     # EUP slot, ~free
        out = acc_sc[...] * inv_l                                         # (H, tq, D) f32
        # Re-pack heads along the lane axis; single lane-dense (tq, H*D) store, once per q tile.
        o_ref[0] = jnp.concatenate([out[h] for h in range(H)],
                                   axis=-1).astype(o_ref.dtype)


def _pick_tile(L, candidates, extra_ok=None):
    """Largest candidate that evenly divides L (and satisfies extra_ok); else the full axis."""
    for t in candidates:
        if L >= t and L % t == 0 and (extra_ok is None or extra_ok(t)):
            return t
    return L


def softmax_attention_pallas(q, k, v, scaled=True, dim_last=True):
    """Matches softmax_attention() from the PyTorch module.  q, k, v: [N, L, H, D]."""
    if not dim_last:
        # [N, H, D, L] -> [N, L, H, D], run the kernel, transpose back.
        to_last = lambda x: jnp.transpose(x, (0, 3, 1, 2))
        out = softmax_attention_pallas(to_last(q), to_last(k), to_last(v),
                                       scaled=scaled, dim_last=True)
        return jnp.transpose(out, (0, 2, 3, 1))

    N, L, H, D = q.shape
    HD = H * D
    scale = float(D) ** (-0.5) if scaled else 1.0

    # Free, contiguous reshapes (no wrapper transpose, no extra HBM pass): heads stay packed
    # along the lane axis, so q/k/v/out tiles are lane-dense whenever H*D >= 128.
    q2 = q.reshape(N, L, HD)
    k2 = k.reshape(N, L, HD)
    v2 = v.reshape(N, L, HD)

    # Big tiles amortize the ~0.35us/grid-step overhead and cut K/V HBM re-reads by L/tq.
    # tq is capped so the "parallel" axes give >= 2 blocks (both v7x TensorCores get work).
    tq = _pick_tile(L, (512, 256, 128), extra_ok=lambda t: N * (L // t) >= 2)
    tk = _pick_tile(L, (1024, 512, 256, 128))
    grid = (N, L // tq, L // tk)

    kernel = functools.partial(_flash_softmax_attn_kernel,
                               scale=scale, num_heads=H, head_dim=D)

    q_spec = pl.BlockSpec((1, tq, HD), lambda b, qi, ki: (b, qi, 0))
    kv_spec = pl.BlockSpec((1, tk, HD), lambda b, qi, ki: (b, ki, 0))
    o_spec = pl.BlockSpec((1, tq, HD), lambda b, qi, ki: (b, qi, 0))

    # VMEM budget: double-buffered I/O blocks + scratch + the large f32 score/prob temporaries
    # (dominant once tiles are big).  Clamped to 64 MiB so it stays valid on v7x.
    itemsize = jnp.dtype(q.dtype).itemsize
    lane_pad = lambda d: -(-d // 128) * 128
    io_bytes = 2 * (tq + 2 * tk) * HD * itemsize + 2 * tq * HD * itemsize
    scratch_bytes = (2 * H * tq * lane_pad(1) * 4            # m, l
                     + H * tq * lane_pad(D) * 4              # acc
                     + H * tq * lane_pad(D) * itemsize)      # cached head-split q
    temp_bytes = (2 * H * tq * tk * 4                        # s, p (f32)
                  + H * tq * tk * itemsize                   # p cast for PV
                  + 2 * H * tk * lane_pad(D) * itemsize)     # head-split k, v
    vmem_limit = int(min(max(int(1.5 * (io_bytes + scratch_bytes + temp_bytes)),
                             32 * 1024 * 1024), 64 * 1024 * 1024))

    n_q_tiles = L // tq
    cost = pl.CostEstimate(
        flops=4 * N * H * L * L * D,                          # QK^T + PV
        transcendentals=N * H * L * L,                        # exp
        # q read + out write + K/V re-read once per q tile.
        bytes_accessed=N * L * HD * itemsize * (2 + 2 * n_q_tiles),
    )

    out2 = pl.pallas_call(
        kernel,
        out_shape=jax.ShapeDtypeStruct((N, L, HD), q.dtype),
        grid_spec=pltpu.PrefetchScalarGridSpec(
            num_scalar_prefetch=0,
            grid=grid,
            in_specs=[q_spec, kv_spec, kv_spec],
            out_specs=o_spec,
            scratch_shapes=[
                pltpu.VMEM((H, tq, D), q.dtype),      # scaled, head-split q cache
                pltpu.VMEM((H, tq, 1), jnp.float32),  # running max
                pltpu.VMEM((H, tq, 1), jnp.float32),  # running denominator
                pltpu.VMEM((H, tq, D), jnp.float32),  # output accumulator
            ],
        ),
        compiler_params=pltpu.CompilerParams(
            dimension_semantics=("parallel", "parallel", "arbitrary"),
            vmem_limit_bytes=vmem_limit,
        ),
        cost_estimate=cost,
    )(q2, k2, v2)

    return out2.reshape(N, L, H, D)


def softmax_attention_ref(q, k, v, scaled=True):
    """Pure-JAX reference mirroring the PyTorch einsum semantics (dim_last=True)."""
    D = q.shape[-1]
    scale = D ** (-0.5) if scaled else 1.0
    attn = jnp.einsum('bmhd,bnhd->bhmn', q, k) * scale
    attn = jax.nn.softmax(attn, axis=-1)
    return jnp.einsum('bhmn,bnhd->bmhd', attn, v)


def _check(N, L, H, D, key, atol=2e-3, rtol=2e-3):
    kq, kk, kv_ = jax.random.split(key, 3)
    q = jax.random.normal(kq, (N, L, H, D), dtype=jnp.float32)
    k = jax.random.normal(kk, (N, L, H, D), dtype=jnp.float32)
    v = jax.random.normal(kv_, (N, L, H, D), dtype=jnp.float32)

    out = jax.block_until_ready(softmax_attention_pallas(q, k, v, scaled=True))
    ref = softmax_attention_ref(q, k, v, scaled=True)

    assert out.shape == (N, L, H, D)
    if not jnp.allclose(out, ref, atol=atol, rtol=rtol):
        err = float(jnp.max(jnp.abs(out - ref)))
        raise AssertionError(f"mismatch vs reference at {(N, L, H, D)}: max abs err {err}")


if __name__ == "__main__":
    root = jax.random.PRNGKey(0)
    k_small, k_big = jax.random.split(root)
    # Small shape consistent with the module: N=2, L=8, H=4, D=32 (single-tile path).
    _check(2, 8, 4, 32, key=k_small)
    # Exercise the flash path: N=1, L=2048 -> tq=512, tk=1024 (4 q tiles x 2 kv steps).
    _check(1, 2048, 4, 32, key=k_big)
    print("KERNEL_OK")
</pallas_src>

<mosaic_0001>
module attributes {stable_mosaic.version = 11 : i64} {
  func.func @_flash_softmax_attn_kernel(%arg0: i32, %arg1: i32, %arg2: i32, %arg3: memref<1x8x128xf32, #tpu.memory_space<vmem>>, %arg4: memref<1x8x128xf32, #tpu.memory_space<vmem>>, %arg5: memref<1x8x128xf32, #tpu.memory_space<vmem>>, %arg6: memref<1x8x128xf32, #tpu.memory_space<vmem>>, %arg7: memref<4x8x32xf32, #tpu.memory_space<vmem>>, %arg8: memref<4x8x1xf32, #tpu.memory_space<vmem>>, %arg9: memref<4x8x1xf32, #tpu.memory_space<vmem>>, %arg10: memref<4x8x32xf32, #tpu.memory_space<vmem>>) attributes {dimension_semantics = [#tpu.dimension_semantics<parallel>, #tpu.dimension_semantics<parallel>, #tpu.dimension_semantics<arbitrary>], iteration_bounds = array<i64: 2, 1, 1>, scalar_prefetch = 0 : i64, scratch_operands = 4 : i64, tpu.core_type = #tpu.core_type<tc>, window_params = [{transform_indices = @transform_0, window_bounds = array<i64: 1, 8, 128>}, {transform_indices = @transform_1, window_bounds = array<i64: 1, 8, 128>}, {transform_indices = @transform_2, window_bounds = array<i64: 1, 8, 128>}, {transform_indices = @transform_3, window_bounds = array<i64: 1, 8, 128>}]} {
    %c0_i32 = arith.constant 0 : i32
    %0 = arith.cmpi eq, %arg2, %c0_i32 : i32
    %1 = arith.extui %0 : i1 to i32
    %c0_i32_0 = arith.constant 0 : i32
    %2 = arith.cmpi ne, %1, %c0_i32_0 : i32
    scf.if %2 {
      %c0_33 = arith.constant 0 : index
      %c0_34 = arith.constant 0 : index
      %c0_35 = arith.constant 0 : index
      %52 = vector.load %arg3[%c0_33, %c0_34, %c0_35] : memref<1x8x128xf32, #tpu.memory_space<vmem>>, vector<1x8x128xf32>
      %53 = vector.shape_cast %52 : vector<1x8x128xf32> to vector<8x128xf32>
      %cst_36 = arith.constant 0.176776692 : f32
      %54 = vector.broadcast %cst_36 : f32 to vector<8x128xf32>
      %55 = arith.mulf %53, %54 : vector<8x128xf32>
      %56 = vector.extract_strided_slice %55 {offsets = [0, 0], sizes = [8, 32], strides = [1, 1]} : vector<8x128xf32> to vector<8x32xf32>
      %c0_37 = arith.constant 0 : index
      %c0_38 = arith.constant 0 : index
      %c0_39 = arith.constant 0 : index
      %57 = vector.load %arg7[%c0_37, %c0_38, %c0_39] : memref<4x8x32xf32, #tpu.memory_space<vmem>>, vector<1x8x32xf32>
      %58 = vector.shape_cast %57 : vector<1x8x32xf32> to vector<8x32xf32>
      %59 = vector.shape_cast %56 : vector<8x32xf32> to vector<1x8x32xf32>
      tpu.vector_store %arg7[%c0_37, %c0_38, %c0_39], %59 {strides = array<i32>} : memref<4x8x32xf32, #tpu.memory_space<vmem>>, vector<1x8x32xf32>,
      %60 = vector.extract_strided_slice %55 {offsets = [0, 32], sizes = [8, 32], strides = [1, 1]} : vector<8x128xf32> to vector<8x32xf32>
      %c1 = arith.constant 1 : index
      %c0_40 = arith.constant 0 : index
      %c0_41 = arith.constant 0 : index
      %61 = vector.load %arg7[%c1, %c0_40, %c0_41] : memref<4x8x32xf32, #tpu.memory_space<vmem>>, vector<1x8x32xf32>
      %62 = vector.shape_cast %61 : vector<1x8x32xf32> to vector<8x32xf32>
      %63 = vector.shape_cast %60 : vector<8x32xf32> to vector<1x8x32xf32>
      tpu.vector_store %arg7[%c1, %c0_40, %c0_41], %63 {strides = array<i32>} : memref<4x8x32xf32, #tpu.memory_space<vmem>>, vector<1x8x32xf32>,
      %64 = vector.extract_strided_slice %55 {offsets = [0, 64], sizes = [8, 32], strides = [1, 1]} : vector<8x128xf32> to vector<8x32xf32>
      %c2 = arith.constant 2 : index
      %c0_42 = arith.constant 0 : index
      %c0_43 = arith.constant 0 : index
      %65 = vector.load %arg7[%c2, %c0_42, %c0_43] : memref<4x8x32xf32, #tpu.memory_space<vmem>>, vector<1x8x32xf32>
      %66 = vector.shape_cast %65 : vector<1x8x32xf32> to vector<8x32xf32>
      %67 = vector.shape_cast %64 : vector<8x32xf32> to vector<1x8x32xf32>
      tpu.vector_store %arg7[%c2, %c0_42, %c0_43], %67 {strides = array<i32>} : memref<4x8x32xf32, #tpu.memory_space<vmem>>, vector<1x8x32xf32>,
      %68 = vector.extract_strided_slice %55 {offsets = [0, 96], sizes = [8, 32], strides = [1, 1]} : vector<8x128xf32> to vector<8x32xf32>
      %c3 = arith.constant 3 : index
      %c0_44 = arith.constant 0 : index
      %c0_45 = arith.constant 0 : index
      %69 = vector.load %arg7[%c3, %c0_44, %c0_45] : memref<4x8x32xf32, #tpu.memory_space<vmem>>, vector<1x8x32xf32>
      %70 = vector.shape_cast %69 : vector<1x8x32xf32> to vector<8x32xf32>
      %71 = vector.shape_cast %68 : vector<8x32xf32> to vector<1x8x32xf32>
      tpu.vector_store %arg7[%c3, %c0_44, %c0_45], %71 {strides = array<i32>} : memref<4x8x32xf32, #tpu.memory_space<vmem>>, vector<1x8x32xf32>,
      %cst_46 = arith.constant 0xFF800000 : f32
      %72 = vector.broadcast %cst_46 : f32 to vector<4x8x1xf32>
      %c0_47 = arith.constant 0 : index
      %c0_48 = arith.constant 0 : index
      %c0_49 = arith.constant 0 : index
      %73 = vector.load %arg8[%c0_47, %c0_48, %c0_49] : memref<4x8x1xf32, #tpu.memory_space<vmem>>, vector<4x8x1xf32>
      tpu.vector_store %arg8[%c0_47, %c0_48, %c0_49], %72 {strides = array<i32>} : memref<4x8x1xf32, #tpu.memory_space<vmem>>, vector<4x8x1xf32>,
      %cst_50 = arith.constant 0.000000e+00 : f32
      %74 = vector.broadcast %cst_50 : f32 to vector<4x8x1xf32>
      %c0_51 = arith.constant 0 : index
      %c0_52 = arith.constant 0 : index
      %c0_53 = arith.constant 0 : index
      %75 = vector.load %arg9[%c0_51, %c0_52, %c0_53] : memref<4x8x1xf32, #tpu.memory_space<vmem>>, vector<4x8x1xf32>
      tpu.vector_store %arg9[%c0_51, %c0_52, %c0_53], %74 {strides = array<i32>} : memref<4x8x1xf32, #tpu.memory_space<vmem>>, vector<4x8x1xf32>,
      %cst_54 = arith.constant 0.000000e+00 : f32
      %76 = vector.broadcast %cst_54 : f32 to vector<4x8x32xf32>
      %c0_55 = arith.constant 0 : index
      %c0_56 = arith.constant 0 : index
      %c0_57 = arith.constant 0 : index
      %77 = vector.load %arg10[%c0_55, %c0_56, %c0_57] : memref<4x8x32xf32, #tpu.memory_space<vmem>>, vector<4x8x32xf32>
      tpu.vector_store %arg10[%c0_55, %c0_56, %c0_57], %76 {strides = array<i32>} : memref<4x8x32xf32, #tpu.memory_space<vmem>>, vector<4x8x32xf32>,
    } else {
    }
    %c0 = arith.constant 0 : index
    %c0_1 = arith.constant 0 : index
    %c0_2 = arith.constant 0 : index
    %3 = vector.load %arg4[%c0, %c0_1, %c0_2] : memref<1x8x128xf32, #tpu.memory_space<vmem>>, vector<1x8x128xf32>
    %4 = vector.shape_cast %3 : vector<1x8x128xf32> to vector<8x128xf32>
    %c0_3 = arith.constant 0 : index
    %c0_4 = arith.constant 0 : index
    %c0_5 = arith.constant 0 : index
    %5 = vector.load %arg5[%c0_3, %c0_4, %c0_5] : memref<1x8x128xf32, #tpu.memory_space<vmem>>, vector<1x8x128xf32>
    %6 = vector.shape_cast %5 : vector<1x8x128xf32> to vector<8x128xf32>
    %7 = vector.extract_strided_slice %4 {offsets = [0, 0], sizes = [8, 32], strides = [1, 1]} : vector<8x128xf32> to vector<8x32xf32>
    %8 = vector.extract_strided_slice %4 {offsets = [0, 32], sizes = [8, 32], strides = [1, 1]} : vector<8x128xf32> to vector<8x32xf32>
    %9 = vector.extract_strided_slice %4 {offsets = [0, 64], sizes = [8, 32], strides = [1, 1]} : vector<8x128xf32> to vector<8x32xf32>
    %10 = vector.extract_strided_slice %4 {offsets = [0, 96], sizes = [8, 32], strides = [1, 1]} : vector<8x128xf32> to vector<8x32xf32>
    %11 = vector.shape_cast %7 : vector<8x32xf32> to vector<1x8x32xf32>
    %12 = vector.shape_cast %8 : vector<8x32xf32> to vector<1x8x32xf32>
    %13 = vector.shape_cast %9 : vector<8x32xf32> to vector<1x8x32xf32>
    %14 = vector.shape_cast %10 : vector<8x32xf32> to vector<1x8x32xf32>
    %15 = tpu.concatenate %11, %12, %13, %14 in 0 : vector<1x8x32xf32>, vector<1x8x32xf32>, vector<1x8x32xf32>, vector<1x8x32xf32> -> vector<4x8x32xf32>
    %16 = vector.extract_strided_slice %6 {offsets = [0, 0], sizes = [8, 32], strides = [1, 1]} : vector<8x128xf32> to vector<8x32xf32>
    %17 = vector.extract_strided_slice %6 {offsets = [0, 32], sizes = [8, 32], strides = [1, 1]} : vector<8x128xf32> to vector<8x32xf32>
    %18 = vector.extract_strided_slice %6 {offsets = [0, 64], sizes = [8, 32], strides = [1, 1]} : vector<8x128xf32> to vector<8x32xf32>
    %19 = vector.extract_strided_slice %6 {offsets = [0, 96], sizes = [8, 32], strides = [1, 1]} : vector<8x128xf32> to vector<8x32xf32>
    %20 = vector.shape_cast %16 : vector<8x32xf32> to vector<1x8x32xf32>
    %21 = vector.shape_cast %17 : vector<8x32xf32> to vector<1x8x32xf32>
    %22 = vector.shape_cast %18 : vector<8x32xf32> to vector<1x8x32xf32>
    %23 = vector.shape_cast %19 : vector<8x32xf32> to vector<1x8x32xf32>
    %24 = tpu.concatenate %20, %21, %22, %23 in 0 : vector<1x8x32xf32>, vector<1x8x32xf32>, vector<1x8x32xf32>, vector<1x8x32xf32> -> vector<4x8x32xf32>
    %c0_6 = arith.constant 0 : index
    %c0_7 = arith.constant 0 : index
    %c0_8 = arith.constant 0 : index
    %25 = vector.load %arg7[%c0_6, %c0_7, %c0_8] : memref<4x8x32xf32, #tpu.memory_space<vmem>>, vector<4x8x32xf32>
    "tpu.trace_start"() <{level = 10 : i32, message = "hqd,hkd->hqk"}> : () -> ()
    %cst = arith.constant dense<0.000000e+00> : vector<4x8x8xf32>
    %26 = tpu.matmul %25, %15, %cst {dimension_numbers = #tpu.dot_dimension_numbers<[2], [2], [1], [1], [0, 0, 0, 1, 1, 1], [0], [0]>} : vector<4x8x32xf32>, vector<4x8x32xf32>, vector<4x8x8xf32> -> vector<4x8x8xf32>
    "tpu.trace_stop"() : () -> ()
    %c0_9 = arith.constant 0 : index
    %c0_10 = arith.constant 0 : index
    %c0_11 = arith.constant 0 : index
    %27 = vector.load %arg8[%c0_9, %c0_10, %c0_11] : memref<4x8x1xf32, #tpu.memory_space<vmem>>, vector<4x8x1xf32>
    %cst_12 = arith.constant dense<0xFF800000> : vector<4x8xf32>
    %28 = vector.multi_reduction <maximumf>, %26, %cst_12 [2] : vector<4x8x8xf32> to vector<4x8xf32>
    %29 = vector.shape_cast %28 : vector<4x8xf32> to vector<4x8x1xf32>
    %30 = arith.maximumf %27, %29 : vector<4x8x1xf32>
    %31 = arith.subf %27, %30 : vector<4x8x1xf32>
    %32 = math.exp %31 : vector<4x8x1xf32>
    %33 = vector.broadcast %30 : vector<4x8x1xf32> to vector<4x8x8xf32>
    %34 = arith.subf %26, %33 : vector<4x8x8xf32>
    %35 = math.exp %34 : vector<4x8x8xf32>
    %cst_13 = arith.constant 1.000000e+00 : f32
    %36 = vector.broadcast %cst_13 : f32 to vector<4x8x1xf32>
    "tpu.trace_start"() <{level = 10 : i32, message = "hqk,hkd->hqd"}> : () -> ()
    %cst_14 = arith.constant dense<0.000000e+00> : vector<4x8x1xf32>
    %37 = tpu.matmul %35, %36, %cst_14 {dimension_numbers = #tpu.dot_dimension_numbers<[2], [1], [1], [2], [0, 0, 0, 1, 1, 2], [0], [0]>} : vector<4x8x8xf32>, vector<4x8x1xf32>, vector<4x8x1xf32> -> vector<4x8x1xf32>
    "tpu.trace_stop"() : () -> ()
    %c0_15 = arith.constant 0 : index
    %c0_16 = arith.constant 0 : index
    %c0_17 = arith.constant 0 : index
    %38 = vector.load %arg9[%c0_15, %c0_16, %c0_17] : memref<4x8x1xf32, #tpu.memory_space<vmem>>, vector<4x8x1xf32>
    %39 = arith.mulf %32, %38 : vector<4x8x1xf32>
    %40 = arith.addf %39, %37 : vector<4x8x1xf32>
    %c0_18 = arith.constant 0 : index
    %c0_19 = arith.constant 0 : index
    %c0_20 = arith.constant 0 : index
    %41 = vector.load %arg9[%c0_18, %c0_19, %c0_20] : memref<4x8x1xf32, #tpu.memory_space<vmem>>, vector<4x8x1xf32>
    tpu.vector_store %arg9[%c0_18, %c0_19, %c0_20], %40 {strides = array<i32>} : memref<4x8x1xf32, #tpu.memory_space<vmem>>, vector<4x8x1xf32>,
    "tpu.trace_start"() <{level = 10 : i32, message = "hqk,hkd->hqd"}> : () -> ()
    %cst_21 = arith.constant dense<0.000000e+00> : vector<4x8x32xf32>
    %42 = tpu.matmul %35, %24, %cst_21 {dimension_numbers = #tpu.dot_dimension_numbers<[2], [1], [1], [2], [0, 0, 0, 1, 1, 2], [0], [0]>} : vector<4x8x8xf32>, vector<4x8x32xf32>, vector<4x8x32xf32> -> vector<4x8x32xf32>
    "tpu.trace_stop"() : () -> ()
    %c0_22 = arith.constant 0 : index
    %c0_23 = arith.constant 0 : index
    %c0_24 = arith.constant 0 : index
    %43 = vector.load %arg10[%c0_22, %c0_23, %c0_24] : memref<4x8x32xf32, #tpu.memory_space<vmem>>, vector<4x8x32xf32>
    %44 = vector.broadcast %32 : vector<4x8x1xf32> to vector<4x8x32xf32>
    %45 = arith.mulf %44, %43 : vector<4x8x32xf32>
    %46 = arith.addf %45, %42 : vector<4x8x32xf32>
    %c0_25 = arith.constant 0 : index
    %c0_26 = arith.constant 0 : index
    %c0_27 = arith.constant 0 : index
    %47 = vector.load %arg10[%c0_25, %c0_26, %c0_27] : memref<4x8x32xf32, #tpu.memory_space<vmem>>, vector<4x8x32xf32>
    tpu.vector_store %arg10[%c0_25, %c0_26, %c0_27], %46 {strides = array<i32>} : memref<4x8x32xf32, #tpu.memory_space<vmem>>, vector<4x8x32xf32>,
    %c0_28 = arith.constant 0 : index
    %c0_29 = arith.constant 0 : index
    %c0_30 = arith.constant 0 : index
    %48 = vector.load %arg8[%c0_28, %c0_29, %c0_30] : memref<4x8x1xf32, #tpu.memory_space<vmem>>, vector<4x8x1xf32>
    tpu.vector_store %arg8[%c0_28, %c0_29, %c0_30], %30 {strides = array<i32>} : memref<4x8x1xf32, #tpu.memory_space<vmem>>, vector<4x8x1xf32>,
    %c0_i32_31 = arith.constant 0 : i32
    %49 = arith.cmpi eq, %arg2, %c0_i32_31 : i32
    %50 = arith.extui %49 : i1 to i32
    %c0_i32_32 = arith.constant 0 : i32
    %51 = arith.cmpi ne, %50, %c0_i32_32 : i32
    scf.if %51 {
      %c0_33 = arith.constant 0 : index
      %c0_34 = arith.constant 0 : index
      %c0_35 = arith.constant 0 : index
      %52 = vector.load %arg9[%c0_33, %c0_34, %c0_35] : memref<4x8x1xf32, #tpu.memory_space<vmem>>, vector<4x8x1xf32>
      %53 = tpu.reciprocal %52 {approx = true} : vector<4x8x1xf32> -> vector<4x8x1xf32>
      %c0_36 = arith.constant 0 : index
      %c0_37 = arith.constant 0 : index
      %c0_38 = arith.constant 0 : index
      %54 = vector.load %arg10[%c0_36, %c0_37, %c0_38] : memref<4x8x32xf32, #tpu.memory_space<vmem>>, vector<4x8x32xf32>
      %55 = vector.broadcast %53 : vector<4x8x1xf32> to vector<4x8x32xf32>
      %56 = arith.mulf %54, %55 : vector<4x8x32xf32>
      %57 = vector.extract_strided_slice %56 {offsets = [0, 0, 0], sizes = [1, 8, 32], strides = [1, 1, 1]} : vector<4x8x32xf32> to vector<1x8x32xf32>
      %58 = vector.shape_cast %57 : vector<1x8x32xf32> to vector<8x32xf32>
      %59 = vector.extract_strided_slice %56 {offsets = [1, 0, 0], sizes = [1, 8, 32], strides = [1, 1, 1]} : vector<4x8x32xf32> to vector<1x8x32xf32>
      %60 = vector.shape_cast %59 : vector<1x8x32xf32> to vector<8x32xf32>
      %61 = vector.extract_strided_slice %56 {offsets = [2, 0, 0], sizes = [1, 8, 32], strides = [1, 1, 1]} : vector<4x8x32xf32> to vector<1x8x32xf32>
      %62 = vector.shape_cast %61 : vector<1x8x32xf32> to vector<8x32xf32>
      %63 = vector.extract_strided_slice %56 {offsets = [3, 0, 0], sizes = [1, 8, 32], strides = [1, 1, 1]} : vector<4x8x32xf32> to vector<1x8x32xf32>
      %64 = vector.shape_cast %63 : vector<1x8x32xf32> to vector<8x32xf32>
      %65 = tpu.concatenate %58, %60, %62, %64 in 1 : vector<8x32xf32>, vector<8x32xf32>, vector<8x32xf32>, vector<8x32xf32> -> vector<8x128xf32>
      %c0_39 = arith.constant 0 : index
      %c0_40 = arith.constant 0 : index
      %c0_41 = arith.constant 0 : index
      %66 = vector.load %arg6[%c0_39, %c0_40, %c0_41] : memref<1x8x128xf32, #tpu.memory_space<vmem>>, vector<1x8x128xf32>
      %67 = vector.shape_cast %66 : vector<1x8x128xf32> to vector<8x128xf32>
      %68 = vector.shape_cast %65 : vector<8x128xf32> to vector<1x8x128xf32>
      tpu.vector_store %arg6[%c0_39, %c0_40, %c0_41], %68 {strides = array<i32>} : memref<1x8x128xf32, #tpu.memory_space<vmem>>, vector<1x8x128xf32>,
    } else {
    }
    return
  }
  func.func @transform_0(%arg0: i32, %arg1: i32, %arg2: i32) -> (i32, i32, i32) {
    %c0_i32 = arith.constant 0 : i32
    %c0_i32_0 = arith.constant 0 : i32
    return %arg0, %arg1, %c0_i32 : i32, i32, i32
  }
  func.func @transform_1(%arg0: i32, %arg1: i32, %arg2: i32) -> (i32, i32, i32) {
    %c0_i32 = arith.constant 0 : i32
    %c0_i32_0 = arith.constant 0 : i32
    return %arg0, %arg2, %c0_i32 : i32, i32, i32
  }
  func.func @transform_2(%arg0: i32, %arg1: i32, %arg2: i32) -> (i32, i32, i32) {
    %c0_i32 = arith.constant 0 : i32
    %c0_i32_0 = arith.constant 0 : i32
    return %arg0, %arg2, %c0_i32 : i32, i32, i32
  }
  func.func @transform_3(%arg0: i32, %arg1: i32, %arg2: i32) -> (i32, i32, i32) {
    %c0_i32 = arith.constant 0 : i32
    %c0_i32_0 = arith.constant 0 : i32
    return %arg0, %arg1, %c0_i32 : i32, i32, i32
  }
}

</mosaic_0001>

<bundles_post_ra>
// kernel: tpu_custom_call.1
= control target key start
LH: loop header
LB: loop body
LE: loop exit
PB: predicated region body
PF: predicated region fallthrough
CT: control target
= control target key end

     0   :  { %s2382_s0 = inlined_call_operand.hbm [shape: f32[2,8,128], index: 0, kind: input, shape index: {}]   ;;  %s2383_s1 = inlined_call_operand.hbm [shape: f32[2,8,128], index: 1, kind: input, shape index: {}]   ;;  %s2384_s2 = inlined_call_operand.hbm [shape: f32[2,8,128], index: 2, kind: input, shape index: {}]   ;;  %s2385_s3 = inlined_call_operand.hbm [shape: f32[2,8,128], index: 3, kind: output, shape index: {}]  }
   0x1   :  { %2391 = sst [smem:[#allocation19_spill]] %s2383_s1 }
   0x2   :  { %8 = vsyncpa [#allocation7], 0 }
   0x3   :  { %10 = vsyncpa [#allocation7 + $0x1], 0 }
   0x4   :  { %11 = vsyncpa [#allocation10], 0 }
   0x5   :  { %13 = vsyncpa [#allocation10 + $0x1], 0 }
   0x6   :  { %14 = vsyncpa [#allocation8], 0 }
   0x7   :  { %16 = vsyncpa [#allocation8 + $0x1], 0  ;;  %s1977_s12 = smov 0   ;;  %s1979_s13 = smov 0  }
   0x8   :  { %s1981_s14 = smov 0   ;;  %s1983_s15 = smov 0  }
   0x9   :  { %s1985_s16 = smov 0   ;;  %s1987_s17 = smov 0  }
   0xa LB: > { %2392 = sst [smem:[#allocation16_spill]] %s1939_s16  ;;  %s2008_s18 = sadd.s32 4294967295, %s1943_s17   ;;  %s1943_s17 = sphi %s1987_s17, %s22_s17   ;;  %s1939_s16 = sphi %s1985_s16, %s2413_s16   ;;  %s1935_s15 = sphi %s1983_s15, %s2412_s15   ;;  %s1931_s14 = sphi %s1981_s14, %s2416_s14   ;;  %s1927_s13 = sphi %s1979_s13, %s2415_s13   ;;  %s1923_s12 = sphi %s1977_s12, %s2414_s12  }
   0xb   : > { %s1543_s19 = sadd.s32 4294967294, %s1943_s17   ;;  %s41_s20 = sadd.s32 1, %s1939_s16 }
   0xc   : > { %s50_s21 = sadd.s32 1, %s1931_s14  ;;  %p43_p0 = scmp.ge.s32.totalorder %s41_s20, 2 }
   0xd   : > { %p57_p1 = scmp.ne.s32.totalorder %s1931_s14, %s1927_s13  ;;  %p58_p2 = scmp.eq.s32.totalorder %s1943_s17, 0 }
   0xe   : > { %p63_p3 = scmp.ne.s32.totalorder %s1927_s13, %s1923_s12  ;;  %s2418_s20 = smov (%p43_p0, %s41_s20), 0 }
   0xf   : > { %2393 = sst [smem:[#allocation17_spill]] %s2418_s20  ;;  %p2020_p4 = por %p58_p2, %p57_p1 }
  0x10   : > { %p64_p5 = scmp.eq.s32.totalorder %s2008_s18, 0  ;;  %s45_s23 = ssub.s32 %s1939_s16, %s2418_s20 }
  0x11   : > { %p145_p6 = scmp.eq.s32.totalorder %s2008_s18, 1  ;;  %p48_p7 = scmp.eq.s32.totalorder %s45_s23, 0 }
  0x12   : > { %p2028_p8 = por %p64_p5, %p63_p3  ;;  %p151_p10 = scmp.eq.s32.totalorder %s1543_s19, 1 }
  0x13   : > { %p2032_p9 = por %p145_p6, %p57_p1  ;;  %p1683_p13 = scmp.lt.s32.totalorder %s1943_s17, 2 }
  0x14   : > { %s2395_s24 = scalar_select %p2028_p8, 1, 0 }
  0x15   : > { %s2396_s25 = scalar_select %p2032_p9, 1, 0 }
  0x16   : > { %s2037_s26 = scalar_select %p48_p7, %s1931_s14, %s50_s21  }
  0x17   : > { %p2039_p11 = por %p151_p10, %p63_p3  ;;  %s171_s28 = sand.u32 1, %s1931_s14  }
  0x18   : > { %2397 = sst [smem:[#allocation18_spill]] %s2037_s26  ;;  %s2048_s29 = sshll.u32 %s171_s28, 3 }
  0x19   : > { %s2398_s27 = scalar_select %p2039_p11, 1, 0 }
  0x1a   : > { %s2051_s30 = sshll.u32 %s1939_s16, 7  ;;  %p2055_p0 = pnand %p1683_p13, %p2020_p4 }
  0x1b   : > { %s190_s5 = sand.u32 1, %s1943_s17   ;;  %s2400_s1 = sld [smem:[#allocation19_spill]] }
  0x1c   : > { %s2399_s4 = scalar_select %p2055_p0, 1, 0 }
  0x1d   : > { %s194_s9 = scalar_lea.vmem [#allocation9], %s2048_s29  ;;  %s2071_s11 = scalar_lea.sflag [#allocation10], %s190_s5 }
  0x1e   : > { %s202_s10 = sshll.u32 %s194_s9, 4  ;;  %p2077_p4 = pneg %p2055_p0  ;;  %s2068_s10 = int_to_ptr.vmem [resolvable:$true] %s202_s10 }
  0x21   : > { %s2064_s8 = scalar_lea.hbm %s2400_s1, %s2051_s30  ;;  %s1772_s6 = scalar_lea.hbm %s2400_s1, 256 }
  0x22   : > { %s1767_s19 = scalar_lea.hbm %s2064_s8, 128  ;;  %p1773_p7 = scmp.lt.u32.totalorder %s2064_s8, %s2400_s1 }
  0x23   : > { %p1768_p3 = scmp.ne.s32.totalorder %s2064_s8, %s1767_s19  ;;  %p1774_p10 = scmp.lt.u32.totalorder %s1772_s6, %s1767_s19 }
  0x24   : > { %p1776_p12 = scmp.lt.u32.totalorder %s1767_s19, %s2064_s8 }
  0x25   : > { %p1770_p5 = pnand %p2077_p4, %p1768_p3  ;;  %p1775_p13 = por %p1774_p10, %p1773_p7 }
  0x27   : > { %p1771_p6 = pneg %p1770_p5  ;;  %p1777_p1 = por %p1776_p12, %p1775_p13 }
  0x29   : > { %p1778_p2 = pnand %p1777_p1, %p1771_p6 }
  0x2b   : > { %1781 = shalt.err (!%p1778_p2)
}
  0x2c   : > { %s1782_s5 = scalar_lea.vmem %s2068_s10, 128  ;;  %s1945_s22 = smov [#allocation9]  }
  0x2d   : > { %p1783_p3 = scmp.ne.s32.totalorder %s2068_s10, %s1782_s5  ;;  %s1787_s23 = sshll.u32 %s1945_s22, 4  ;;  %s1788_s23 = int_to_ptr.vmem [resolvable:$false] %s1787_s23 }
  0x2e   : > { %s1789_s7 = scalar_lea.vmem %s1788_s23, 256  ;;  %p1790_p9 = scmp.lt.s32.totalorder %s2068_s10, %s1788_s23 }
  0x2f   : > { %p1785_p5 = pnand %p1783_p3, %p2077_p4  ;;  %p1791_p8 = scmp.lt.s32.totalorder %s1789_s7, %s1782_s5 }
  0x31   : > { %p1786_p11 = pneg %p1785_p5  ;;  %p1792_p7 = por %p1791_p8, %p1790_p9 }
  0x33   : > { %p1793_p10 = pnand %p1792_p7, %p1786_p11 }
  0x35   : > { %1796 = shalt.err (!%p1793_p10)
}
  0x36   : > { %1675 = dma.hbm_to_vmem [thread:$0]  (!%p2055_p0), %s2064_s8, 128, %s2068_s10, %s2071_s11  }
  0x37   : > { %p2402_p12 = scmp.lt.s32.totalorder %s1943_s17, 3  ;;  %p2403_p1 = scmp.ge.s32.totalorder %s1943_s17, 1 }
  0x38   : > { %s2113_s5 = scalar_lea.hbm %s2382_s0, %s2051_s30  ;;  %s175_s22 = scalar_lea.vmem [#allocation6], %s2048_s29 }
  0x39   : > { %p2105_p2 = pnand %p2403_p1, %p2402_p12  ;;  %s183_s23 = sshll.u32 %s175_s22, 4  ;;  %s2116_s23 = int_to_ptr.vmem [resolvable:$true] %s183_s23 }
  0x3a   : > { %s2122_s7 = scalar_lea.hbm %s2384_s2, %s2051_s30  ;;  %s172_s1 = scalar_lea.sflag [#allocation7], %s171_s28 }
  0x3b   : > { %s2404_s19 = scalar_select %p2105_p2, 1, 0 }
  0x3c   : > { %s1797_s20 = scalar_lea.hbm %s2113_s5, 128  ;;  %s1802_s16 = scalar_lea.hbm %s2382_s0, 256 }
  0x3d   : > { %p1798_p8 = scmp.ne.s32.totalorder %s2113_s5, %s1797_s20  ;;  %p1803_p6 = scmp.lt.u32.totalorder %s2113_s5, %s2382_s0 }
  0x3e   : > { %p1804_p13 = scmp.lt.u32.totalorder %s1802_s16, %s1797_s20  ;;  %p1806_p5 = scmp.lt.u32.totalorder %s1797_s20, %s2113_s5 }
  0x3f   : > { %p1800_p9 = pnand %p1798_p8, %p2077_p4 }
  0x40   : > { %p1805_p3 = por %p1804_p13, %p1803_p6 }
  0x41   : > { %p1801_p11 = pneg %p1800_p9 }
  0x42   : > { %p1807_p7 = por %p1806_p5, %p1805_p3 }
  0x44   : > { %p1808_p10 = pnand %p1807_p7, %p1801_p11 }
  0x46   : > { %1811 = shalt.err (!%p1808_p10)
}
  0x47   : > { %s1812_s28 = scalar_lea.vmem %s2116_s23, 128  ;;  %s1946_s30 = smov [#allocation6]  }
  0x48   : > { %p1813_p12 = scmp.ne.s32.totalorder %s2116_s23, %s1812_s28  ;;  %s1817_s8 = sshll.u32 %s1946_s30, 4  ;;  %s1818_s8 = int_to_ptr.vmem [resolvable:$false] %s1817_s8 }
  0x49   : > { %s1819_s26 = scalar_lea.vmem %s1818_s8, 256  ;;  %p1820_p9 = scmp.lt.s32.totalorder %s2116_s23, %s1818_s8 }
  0x4a   : > { %p1815_p1 = pnand %p1813_p12, %p2077_p4  ;;  %p1821_p2 = scmp.lt.s32.totalorder %s1819_s26, %s1812_s28 }
  0x4c   : > { %p1816_p8 = pneg %p1815_p1  ;;  %p1822_p6 = por %p1821_p2, %p1820_p9 }
  0x4e   : > { %p1823_p13 = pnand %p1822_p6, %p1816_p8 }
  0x50   : > { %1826 = shalt.err (!%p1823_p13)
}
  0x51   : > { %1672 = dma.hbm_to_vmem [thread:$0]  (!%p2055_p0), %s2113_s5, 128, %s2116_s23, %s172_s1  }
  0x52   : > { %s213_s16 = scalar_lea.vmem [#allocation11], %s2048_s29  ;;  %s1827_s10 = scalar_lea.hbm %s2122_s7, 128 }
  0x53   : > { %s221_s20 = sshll.u32 %s213_s16, 4  ;;  %p1828_p11 = scmp.ne.s32.totalorder %s2122_s7, %s1827_s10  ;;  %s222_s20 = int_to_ptr.vmem [resolvable:$true] %s221_s20 }
  0x54   : > { %s1832_s22 = scalar_lea.hbm %s2384_s2, 256  ;;  %p1833_p5 = scmp.lt.u32.totalorder %s2122_s7, %s2384_s2 }
  0x55   : > { %p1830_p2 = pnand %p1828_p11, %p2077_p4  ;;  %p1834_p7 = scmp.lt.u32.totalorder %s1832_s22, %s1827_s10 }
  0x56   : > { %p1836_p12 = scmp.lt.u32.totalorder %s1827_s10, %s2122_s7 }
  0x57   : > { %p1831_p3 = pneg %p1830_p2  ;;  %p1835_p10 = por %p1834_p7, %p1833_p5 }
  0x59   : > { %p1837_p1 = por %p1836_p12, %p1835_p10 }
  0x5b   : > { %p1838_p8 = pnand %p1837_p1, %p1831_p3 }
  0x5d   : > { %1841 = shalt.err (!%p1838_p8)
}
  0x5e   : > { %s1842_s1 = scalar_lea.vmem %s222_s20, 128  ;;  %s1947_s29 = smov [#allocation11]  }
  0x5f   : > { %p1843_p9 = scmp.ne.s32.totalorder %s222_s20, %s1842_s1  ;;  %s1847_s5 = sshll.u32 %s1947_s29, 4  ;;  %s1848_s5 = int_to_ptr.vmem [resolvable:$false] %s1847_s5 }
  0x60   : > { %s1849_s23 = scalar_lea.vmem %s1848_s5, 256  ;;  %p1850_p11 = scmp.lt.s32.totalorder %s222_s20, %s1848_s5 }
  0x61   : > { %p1845_p6 = pnand %p1843_p9, %p2077_p4  ;;  %p1851_p2 = scmp.lt.s32.totalorder %s1849_s23, %s1842_s1 }
  0x63   : > { %p1846_p13 = pneg %p1845_p6  ;;  %p1852_p0 = por %p1851_p2, %p1850_p11 }
  0x65   : > { %p1853_p5 = pnand %p1852_p0, %p1846_p13 }
  0x67   : > { %1856 = shalt.err (!%p1853_p5)
}
  0x68   : > { %p2405_p7 = scmp.ne.s32.totalorder %s2399_s4, 0  ;;  %p2406_p3 = scmp.ne.s32.totalorder %s2404_s19, 0 }
  0x69   : > { %s2169_s21 = sand.u32 (!%p2406_p3), 1, %s1927_s13   ;;  %p2407_p0 = scmp.ne.s32.totalorder (!%p2406_p3), %s2395_s24, 0 }
  0x6a   : > { %1678 = dma.hbm_to_vmem [thread:$0]  (!%p2405_p7), %s2122_s7, 128, %s222_s20, %s2071_s11  }
  0x6b   : > { %230 = sbr.rel (%p2406_p3) target bundleno = 1245 (0x4dd), region = 32  ;;  %s2172_s8 = sshll.u32 (!%p2406_p3), %s2169_s21, 3 }
  0x6c   : > { %s233_s26 = scalar_lea.sflag (!%p2406_p3), [#allocation7], %s2169_s21  ;;  %s236_s16 = scalar_lea.vmem (!%p2406_p3), [#allocation6], %s2172_s8 }
  0x72   : > { %1910 = dma.done.wait (%p2407_p0), %s233_s26, 128  }
  0x73   : > { %1912 = vsyncadd (%p2407_p0), %s233_s26, 4294967168  ;;  %s241_s4 = sand.u32 1, %s2008_s18   ;;  %s245_s19 = scalar_lea.vmem [#allocation9], %s2172_s8 }
  0x74   : > { %s242_s11 = scalar_lea.sflag [#allocation10], %s241_s4 }
  0x75   : > { %1914 = dma.done.wait (%p2407_p0), %s242_s11, 256  }
  0x76   : > { %1916 = vsyncadd (%p2407_p0), %s242_s11, 4294967040  ;;  %vm293_vm0 = vcmask 261120   ;;  %v1948_v0 = vmov 0.0   ;;  %vm1949_vm1 = vmmov 0   ;;  %v291_v1 = vld [vmem:[%s236_s16] sm:$0xff]  ;;  %v324_v2 = vld [vmem:[%s245_s19] sm:$0xff] }
  0x77   : > { %1601 = vmatprep.subr.mxu0 %v1948_v0  ;;  %320 = vst.msk [vmem:[#allocation5] sm:$0xff] %vm293_vm0, %v1948_v0  ;;  %321 = vst.msk [vmem:[#allocation5 + $0x8] sm:$0xff] %vm293_vm0, %v1948_v0  ;;  %1603 = vmatprep.mubr.msk.f32.mxu0 %vm1949_vm1, %v1948_v0  ;;  %v292_v3 = vmul.f32 0.17677669, %v291_v1  ;;  %s1950_s18 = smov 96   ;;  %s1951_s24 = smov 32  }
  0x78   : > { %322 = vst.msk [vmem:[#allocation5 + $0x10] sm:$0xff] %vm293_vm0, %v1948_v0  ;;  %323 = vst.msk [vmem:[#allocation5 + $0x18] sm:$0xff] %vm293_vm0, %v1948_v0  ;;  %1606 = vmatprep.subr.mxu1 %v1948_v0  ;;  %1608 = vmatprep.mubr.msk.f32.mxu1 %vm1949_vm1, %v1948_v0  ;;  %s1952_s7 = smov 64   ;;  %vm311_vm2 = vcmask 7168   ;;  %vm652_vm3 = vcmask 64512   ;;  %v1953_v14 = vmov -inf  }
  0x79   : > { %1602 = vmatpush3.xpose.msk.msra.mxu0 %vm293_vm0, %v324_v2  ;;  %296 = vrot.lane.b32.xlu0 %v292_v3, %s1950_s18  ;;  %294 = vst.msk [vmem:[#allocation2] sm:$0xff] %vm293_vm0, %v292_v3  ;;  %v1954_v18 = vmov 0   ;;  %v1955_v32 = vmov 1.0   ;;  %s254_s20 = scalar_lea.vmem [#allocation11], %s2172_s8  ;;  %vm1394_vm4 = vcmask 523264   ;;  %s1574_s10 = sshll.u32 %s1935_s15, 7 }
  0x7a   : > { %1611 = vmatprep.subr.mxu0 %v1948_v0  ;;  %306 = vrot.lane.b32.xlu1 %v292_v3, %s1951_s24  ;;  %312 = vst.msk [vmem:[#allocation3] sm:$0xff] %vm311_vm2, %v1953_v14  ;;  %313 = vst.msk [vmem:[#allocation3 + $0x8] sm:$0xff] %vm311_vm2, %v1953_v14  ;;  %v325_v45 = vld [vmem:[%s254_s20] sm:$0xff]  ;;  %s286_s6 = scalar_lea.vmem [#allocation12], %s2172_s8  ;;  %vm1396_vm5 = vcmask 785408   ;;  %s2333_s30 = scalar_lea.hbm %s2385_s3, %s1574_s10 }
  0x7b   : > { %314 = vst.msk [vmem:[#allocation3 + $0x10] sm:$0xff] %vm311_vm2, %v1953_v14  ;;  %315 = vst.msk [vmem:[#allocation3 + $0x18] sm:$0xff] %vm311_vm2, %v1953_v14  ;;  %1741 = vset.pattern.permute.xlu1 %v1954_v18  ;;  %1742 = vset.pattern.permute.xlu0 %v1954_v18  ;;  %s1414_s9 = sshll.u32 %s286_s6, 4  ;;  %s1400_s15 = scalar_lea.sflag [#allocation8], %s2169_s21  ;;  %s2335_s9 = int_to_ptr.vmem [resolvable:$true] %s1414_s9 }
  0x7c   : > { %316 = vst.msk [vmem:[#allocation4] sm:$0xff] %vm311_vm2, %v1948_v0  ;;  %317 = vst.msk [vmem:[#allocation4 + $0x8] sm:$0xff] %vm311_vm2, %v1948_v0  ;;  %s1857_s1 = scalar_lea.vmem %s2335_s9, 128  ;;  %p2408_p10 = scmp.ne.s32.totalorder %s2396_s25, 0 }
  0x7d   : > { %301 = vrot.lane.b32.xlu0 %v292_v3, %s1952_s7  ;;  %318 = vst.msk [vmem:[#allocation4 + $0x10] sm:$0xff] %vm311_vm2, %v1948_v0  ;;  %319 = vst.msk [vmem:[#allocation4 + $0x18] sm:$0xff] %vm311_vm2, %v1948_v0  ;;  %p1858_p4 = scmp.ne.s32.totalorder %s2335_s9, %s1857_s1  ;;  %s1956_s29 = smov [#allocation12]  }
  0x7e   : > { %327 = vrot.lane.b32.xlu1 %v324_v2, %s1950_s18  ;;  %s1861_s5 = sshll.u32 %s1956_s29, 4  ;;  %s1862_s5 = int_to_ptr.vmem [resolvable:$false] %s1861_s5 }
  0x7f   : > { %p1859_p12 = pnand %p1858_p4, %p2408_p10  ;;  %s1863_s23 = scalar_lea.vmem %s1862_s5, 256 }
  0x80   : > { %v343_v4 = vld [vmem:[#allocation2] sm:$0xff]  ;;  %p1864_p8 = scmp.lt.s32.totalorder %s2335_s9, %s1862_s5  ;;  %p1865_p9 = scmp.lt.s32.totalorder %s1863_s23, %s1857_s1 }
  0x81   : > { %329 = vrot.lane.b32.xlu0 %v324_v2, %s1952_s7  ;;  %1604 = vmatmul.mubr.msk.f32.vlgmr.msra.gmra.mrb[0].mxu0 %vm293_vm0, %v343_v4  ;;  %v2255_v28 = vld [vmem:[#allocation3] sm:$0xff]  ;;  %v649_v33 = vld [vmem:[#allocation3 + $0x8] sm:$0xff]  ;;  %p1860_p1 = pneg %p1859_p12 }
  0x82   : > { %331 = vrot.lane.b32.xlu1 %v324_v2, %s1951_s24  ;;  %1613 = vmatprep.mubr.msk.f32.mxu0 %vm1949_vm1, %v1948_v0  ;;  %v650_v36 = vld [vmem:[#allocation3 + $0x10] sm:$0xff]  ;;  %v651_v39 = vld [vmem:[#allocation3 + $0x18] sm:$0xff]  ;;  %p1866_p6 = por %p1865_p9, %p1864_p8 }
  0x84   : > { %p1867_p13 = pnand %p1866_p6, %p1860_p1 }
  0xeb   : > { %v297_v5 = vpop.permute.xlu0 %296 }
  0xec   : > { %v307_v6 = vpop.permute.xlu1 %306  ;;  %300 = vst.msk [vmem:[#allocation2 + $0x8] sm:$0xff] %vm293_vm0, %v297_v5 }
  0xed   : > { %310 = vst.msk [vmem:[#allocation2 + $0x18] sm:$0xff] %vm293_vm0, %v307_v6 }
  0xef   : > { %v302_v7 = vpop.permute.xlu0 %301 }
  0xf0   : > { %v328_v8 = vpop.permute.xlu1 %327  ;;  %305 = vst.msk [vmem:[#allocation2 + $0x10] sm:$0xff] %vm293_vm0, %v302_v7 }
  0xf1   : > { %1607 = vmatpush3.xpose.msk.msra.mxu1 %vm293_vm0, %v328_v8 }
  0xf2   : > { %1616 = vmatprep.subr.mxu1 %v1948_v0 }
  0xf3   : > { %v330_v9 = vpop.permute.xlu0 %329  ;;  %v344_v10 = vld [vmem:[#allocation2 + $0x8] sm:$0xff] }
  0xf4   : > { %v332_v11 = vpop.permute.xlu1 %331  ;;  %1609 = vmatmul.mubr.msk.f32.vlgmr.msra.gmra.mrb[0].mxu1 %vm293_vm0, %v344_v10  ;;  %1612 = vmatpush3.xpose.msk.msra.mxu0 %vm293_vm0, %v330_v9  ;;  %v346_v12 = vld [vmem:[#allocation2 + $0x18] sm:$0xff]  ;;  %v1005_v10 = vld [vmem:[#allocation4] sm:$0xff] }
  0xf5   : > { %1617 = vmatpush3.xpose.msk.msra.mxu1 %vm293_vm0, %v332_v11  ;;  %1618 = vmatprep.mubr.msk.f32.mxu1 %vm1949_vm1, %v1948_v0 }
  0xf6   : > { %1621 = vmatprep.subr.mxu0 %v1948_v0  ;;  %1626 = vmatprep.subr.mxu1 %v1948_v0 }
  0xf7   : > { %v345_v13 = vld [vmem:[#allocation2 + $0x10] sm:$0xff] }
  0xf8   : > { %1614 = vmatmul.mubr.msk.f32.vlgmr.msra.gmra.mrb[2].mxu0 %vm293_vm0, %v345_v13  ;;  %1619 = vmatmul.mubr.msk.f32.vlgmr.msra.gmra.mrb[2].mxu1 %vm293_vm0, %v346_v12 }
  0xf9   : > { %1623 = vmatprep.mubr.msk.f32.mxu0 %vm1949_vm1, %v1948_v0  ;;  %1628 = vmatprep.mubr.msk.f32.mxu1 %vm1949_vm1, %v1948_v0 }
  0xfa   : > { %1622 = vmatpush3.msra.mxu0 %v1955_v32  ;;  %1627 = vmatpush3.msra.mxu1 %v1955_v32 }
  0xfb   : > { %1631 = vmatprep.subr.mxu0 %v1948_v0  ;;  %1636 = vmatprep.subr.mxu1 %v1948_v0 }
 0x154   : > { %v419_v15 = vpop.f32.mrb[0].mxu0 }
 0x155   : > { %v653_v16 = vsel %vm652_vm3, %v419_v15, -inf  ;;  %v1605_v17 = vpop.f32.mrb[1].mxu0 }
 0x156   : > { %654 = vmax.xlane.f32.xlu0 %v653_v16 }
 0x1c7   : > { %v2243_v19 = vpop.f32.mrb[0].mxu1 }
 0x1c8   : > { %v1610_v20 = vpop.f32.mrb[1].mxu1  ;;  %v656_v21 = vsel %vm652_vm3, %v2243_v19, -inf }
 0x1c9   : > { %657 = vmax.xlane.f32.xlu1 %v656_v21 }
 0x1cb   : > { %v2247_v22 = vpop.f32.mrb[2].mxu0  ;;  %v2249_v23 = vpop.f32.mrb[2].mxu1 }
 0x1cc   : > { %v1615_v24 = vpop.f32.mrb[3].mxu0  ;;  %v1620_v25 = vpop.f32.mrb[3].mxu1  ;;  %v659_v26 = vsel %vm652_vm3, %v2247_v22, -inf  ;;  %v662_v27 = vsel %vm652_vm3, %v2249_v23, -inf }
 0x1cd   : > { %660 = vmax.xlane.f32.xlu0 %v659_v26 }
 0x1d1   : > { %663 = vmax.xlane.f32.xlu0 %v662_v27 }
 0x1e3   : > { %v655_v29 = vpop.xlane.xlu0 %654 }
 0x1e4   : > { %v2258_v30 = vmax.f32 %v2255_v28, %v655_v29  ;;  %v1304_v29 = vld [vmem:[#allocation5 + $0x10] sm:$0xff] }
 0x1e6   : > { %v669_v31 = vsub.f32 %v2255_v28, %v2258_v30  ;;  %1338 = vst.msk [vmem:[#allocation3] sm:$0xff] %vm311_vm2, %v2258_v30  ;;  %683 = vperm.xlu1 %1741, %v2258_v30   ;;  %v1303_v28 = vld [vmem:[#allocation5 + $0x8] sm:$0xff] }
 0x1e8   : > { %v673_v8 = vmul.f32 1.442695, %v669_v31 }
 0x256   : > { %v658_v34 = vpop.xlane.xlu1 %657 }
 0x257   : > { %v666_v35 = vmax.f32 %v649_v33, %v658_v34 }
 0x259   : > { %1339 = vst.msk [vmem:[#allocation3 + $0x8] sm:$0xff] %vm311_vm2, %v666_v35  ;;  %688 = vperm.xlu0 %1742, %v666_v35   ;;  %v670_v40 = vsub.f32 %v649_v33, %v666_v35 }
 0x25a   : > { %v661_v37 = vpop.xlane.xlu0 %660 }
 0x25b   : > { %v667_v38 = vmax.f32 %v650_v36, %v661_v37  ;;  %v675_v44 = vmul.f32 1.442695, %v670_v40 }
 0x25d   : > { %1340 = vst.msk [vmem:[#allocation3 + $0x10] sm:$0xff] %vm311_vm2, %v667_v38  ;;  %693 = vperm.xlu1 %1741, %v667_v38   ;;  %v671_v43 = vsub.f32 %v650_v36, %v667_v38  ;;  %1743 = vpow2.f32 %v675_v44 }
 0x25e   : > { %v664_v41 = vpop.xlane.xlu0 %663 }
 0x25f   : > { %v668_v42 = vmax.f32 %v651_v39, %v664_v41  ;;  %v677_v46 = vmul.f32 1.442695, %v671_v43 }
 0x261   : > { %1341 = vst.msk [vmem:[#allocation3 + $0x18] sm:$0xff] %vm311_vm2, %v668_v42  ;;  %698 = vperm.xlu1 %1741, %v668_v42   ;;  %v672_v48 = vsub.f32 %v651_v39, %v668_v42  ;;  %1745 = vpow2.f32 %v677_v46  ;;  %v1305_v39 = vld [vmem:[#allocation5 + $0x18] sm:$0xff] }
 0x263   : > { %v679_v51 = vmul.f32 1.442695, %v672_v48 }
 0x265   : > { %v684_v47 = vpop.permute.xlu1 %683  ;;  %334 = vrot.lane.b32.xlu1 %v325_v45, %s1950_s18 }
 0x266   : > { %v701_v49 = vsub.f32 %v419_v15, %v684_v47  ;;  %v1006_v15 = vld [vmem:[#allocation4 + $0x8] sm:$0xff] }
 0x267   : > { %v1744_v52 = vpop.eup %1743 }
 0x268   : > { %v705_v50 = vmul.f32 1.442695, %v701_v49  ;;  %v1010_v17 = vmul.f32 %v1744_v52, %v1006_v15 }
 0x269   : > { %337 = vrot.lane.b32.xlu1 %v325_v45, %s1952_s7 }
 0x26a   : > { %1747 = vpow2.f32 %v705_v50 }
 0x26b   : > { %1749 = vpow2.f32 %v679_v51  ;;  %v2276_v53 = vpop.eup %1745 }
 0x26d   : > { %340 = vrot.lane.b32.xlu1 %v325_v45, %s1951_s24 }
 0x271   : > { %1313 = vperm.xlu1 %1741, %v1744_v52  }
 0x274   : > { %v1748_v54 = vpop.eup %1747 }
 0x275   : > { %1624 = vmatmul.mubr.msk.f32.vlgmr.msra.gmra.mrb[4].mxu0 %vm652_vm3, %v1748_v54  ;;  %1318 = vperm.xlu1 %1741, %v2276_v53   ;;  %v2284_v55 = vpop.eup %1749 }
 0x276   : > { %1632 = vmatpush3.msra.mxu0 %v1955_v32  ;;  %1633 = vmatprep.mubr.msk.f32.mxu0 %vm1949_vm1, %v1948_v0 }
 0x277   : > { %1641 = vmatprep.subr.mxu0 %v1948_v0 }
 0x279   : > { %1323 = vperm.xlu1 %1741, %v2284_v55  }
 0x2d8   : > { %v689_v56 = vpop.permute.xlu0 %688 }
 0x2d9   : > { %v702_v57 = vsub.f32 %v2243_v19, %v689_v56 }
 0x2db   : > { %v707_v58 = vmul.f32 1.442695, %v702_v57 }
 0x2dc   : > { %v694_v59 = vpop.permute.xlu1 %693 }
 0x2dd   : > { %1751 = vpow2.f32 %v707_v58  ;;  %v703_v60 = vsub.f32 %v2247_v22, %v694_v59 }
 0x2df   : > { %v709_v61 = vmul.f32 1.442695, %v703_v60 }
 0x2e0   : > { %v699_v62 = vpop.permute.xlu1 %698 }
 0x2e1   : > { %1753 = vpow2.f32 %v709_v61  ;;  %v704_v63 = vsub.f32 %v2249_v23, %v699_v62  ;;  %v1008_v23 = vld [vmem:[#allocation4 + $0x18] sm:$0xff] }
 0x2e2   : > { %v1012_v27 = vmul.f32 %v2284_v55, %v1008_v23 }
 0x2e3   : > { %v711_v1 = vmul.f32 1.442695, %v704_v63  ;;  %v1302_v63 = vld [vmem:[#allocation5] sm:$0xff] }
 0x2e4   : > { %v335_v3 = vpop.permute.xlu1 %334 }
 0x2e5   : > { %1755 = vpow2.f32 %v711_v1 }
 0x2e6   : > { %1757 = vpow2.f32 %v673_v8 }
 0x2e7   : > { %v1752_v2 = vpop.eup %1751 }
 0x2e8   : > { %1629 = vmatmul.mubr.msk.f32.vlgmr.msra.gmra.mrb[4].mxu1 %vm652_vm3, %v1752_v2  ;;  %v338_v5 = vpop.permute.xlu1 %337 }
 0x2e9   : > { %1637 = vmatpush3.msra.mxu1 %v1955_v32  ;;  %1638 = vmatprep.mubr.msk.f32.mxu1 %vm1949_vm1, %v1948_v0 }
 0x2ea   : > { %1646 = vmatprep.subr.mxu1 %v1948_v0 }
 0x2eb   : > { %v1754_v4 = vpop.eup %1753 }
 0x2ec   : > { %1634 = vmatmul.mubr.msk.f32.vlgmr.msra.gmra.mrb[6].mxu0 %vm652_vm3, %v1754_v4  ;;  %v341_v7 = vpop.permute.xlu1 %340 }
 0x2ed   : > { %1642 = vmatpush3.msra.mxu0 %v325_v45  ;;  %1643 = vmatprep.mubr.msk.f32.mxu0 %vm1949_vm1, %v1948_v0 }
 0x2ee   : > { %1651 = vmatprep.subr.mxu0 %v1948_v0 }
 0x2ef   : > { %v1756_v6 = vpop.eup %1755 }
 0x2f0   : > { %1644 = vmatmul.mubr.msk.f32.vlgmr.msra.gmra.mrb[8].mxu0 %vm652_vm3, %v1748_v54  ;;  %1639 = vmatmul.mubr.msk.f32.vlgmr.msra.gmra.mrb[6].mxu1 %vm652_vm3, %v1756_v6  ;;  %v1758_v9 = vpop.eup %1757  ;;  %v1314_v16 = vpop.permute.xlu1 %1313 }
 0x2f1   : > { %1647 = vmatpush3.msra.mxu1 %v335_v3  ;;  %1648 = vmatprep.mubr.msk.f32.mxu1 %vm1949_vm1, %v1948_v0  ;;  %v1009_v11 = vmul.f32 %v1758_v9, %v1005_v10  ;;  %v1327_v36 = vmul.f32 %v1314_v16, %v1303_v28 }
 0x2f2   : > { %1652 = vmatpush3.msra.mxu0 %v338_v5  ;;  %1653 = vmatprep.mubr.msk.f32.mxu0 %vm1949_vm1, %v1948_v0 }
 0x2f3   : > { %1656 = vmatprep.subr.mxu1 %v1948_v0 }
 0x2f4   : > { %1654 = vmatmul.mubr.msk.f32.vlgmr.msra.gmra.mrb[10].mxu0 %vm652_vm3, %v1754_v4  ;;  %1649 = vmatmul.mubr.msk.f32.vlgmr.msra.gmra.mrb[8].mxu1 %vm652_vm3, %v1752_v2  ;;  %v1319_v24 = vpop.permute.xlu1 %1318 }
 0x2f5   : > { %1657 = vmatpush3.msra.mxu1 %v341_v7  ;;  %1658 = vmatprep.mubr.msk.f32.mxu1 %vm1949_vm1, %v1948_v0  ;;  %v1007_v0 = vld [vmem:[#allocation4 + $0x10] sm:$0xff]  ;;  %v1328_v37 = vmul.f32 %v1319_v24, %v1304_v29 }
 0x2f6   : > { %v1011_v21 = vmul.f32 %v2276_v53, %v1007_v0 }
 0x2f8   : > { %1659 = vmatmul.mubr.msk.f32.vlgmr.msra.gmra.mrb[10].mxu1 %vm652_vm3, %v1756_v6  ;;  %v1324_v38 = vpop.permute.xlu1 %1323 }
 0x2f9   : > { %v1329_v47 = vmul.f32 %v1324_v38, %v1305_v39 }
 0x348   : > { %v782_v12 = vpop.f32.mrb[4].mxu0 }
 0x349   : > { %v1013_v13 = vadd.f32 %v1009_v11, %v782_v12  ;;  %v1625_v14 = vpop.f32.mrb[5].mxu0 }
 0x34b   : > { %1018 = vst.msk [vmem:[#allocation4] sm:$0xff] %vm311_vm2, %v1013_v13 }
 0x352   : > { %v1345_v52 = vld [vmem:[#allocation4] sm:$0xff] }
 0x3bb   : > { %v855_v18 = vpop.f32.mrb[4].mxu1 }
 0x3bc   : > { %v1014_v19 = vadd.f32 %v1010_v17, %v855_v18  ;;  %v1630_v20 = vpop.f32.mrb[5].mxu1 }
 0x3be   : > { %1019 = vst.msk [vmem:[#allocation4 + $0x8] sm:$0xff] %vm311_vm2, %v1014_v19 }
 0x3bf   : > { %v928_v22 = vpop.f32.mrb[6].mxu0 }
 0x3c0   : > { %v1015_v25 = vadd.f32 %v1011_v21, %v928_v22  ;;  %v1635_v26 = vpop.f32.mrb[7].mxu0 }
 0x3c2   : > { %1020 = vst.msk [vmem:[#allocation4 + $0x10] sm:$0xff] %vm311_vm2, %v1015_v25 }
 0x3c3   : > { %v1001_v30 = vpop.f32.mrb[6].mxu1  ;;  %v1088_v31 = vpop.f32.mrb[8].mxu0 }
 0x3c4   : > { %v1016_v32 = vadd.f32 %v1012_v27, %v1001_v30  ;;  %v1640_v33 = vpop.f32.mrb[7].mxu1  ;;  %v1645_v34 = vpop.f32.mrb[9].mxu0 }
 0x3c5   : > { %v1346_v35 = vld [vmem:[#allocation4 + $0x8] sm:$0xff] }
 0x3c6   : > { %1021 = vst.msk [vmem:[#allocation4 + $0x18] sm:$0xff] %vm311_vm2, %v1016_v32  ;;  %1759 = vrcp.f32 %v1346_v35 }
 0x3c7   : > { %v1158_v40 = vpop.f32.mrb[8].mxu1  ;;  %v1228_v41 = vpop.f32.mrb[10].mxu0 }
 0x3c8   : > { %v1331_v42 = vadd.f32 %v1327_v36, %v1158_v40  ;;  %v1332_v43 = vadd.f32 %v1328_v37, %v1228_v41  ;;  %v1650_v44 = vpop.f32.mrb[9].mxu1  ;;  %v1655_v45 = vpop.f32.mrb[11].mxu0 }
 0x3c9   : > { %v1347_v46 = vld [vmem:[#allocation4 + $0x10] sm:$0xff] }
 0x3ca   : > { %1335 = vst.msk [vmem:[#allocation5 + $0x8] sm:$0xff] %vm293_vm0, %v1331_v42  ;;  %1336 = vst.msk [vmem:[#allocation5 + $0x10] sm:$0xff] %vm293_vm0, %v1332_v43  ;;  %1761 = vrcp.f32 %v1347_v46 }
 0x3cb   : > { %v1298_v48 = vpop.f32.mrb[10].mxu1 }
 0x3cc   : > { %v1333_v49 = vadd.f32 %v1329_v47, %v1298_v48  ;;  %v1660_v50 = vpop.f32.mrb[11].mxu1 }
 0x3cd   : > { %v1348_v51 = vld [vmem:[#allocation4 + $0x18] sm:$0xff] }
 0x3ce   : > { %1337 = vst.msk [vmem:[#allocation5 + $0x18] sm:$0xff] %vm293_vm0, %v1333_v49  ;;  %1763 = vrcp.f32 %v1348_v51 }
 0x3cf   : > { %1765 = vrcp.f32 %v1345_v52 }
 0x3d0   : > { %v1760_v53 = vpop.eup %1759 }
 0x3d1   : > { %1364 = vperm.xlu0 %1742, %v1760_v53   ;;  %v1354_v58 = vld [vmem:[#allocation5 + $0x8] sm:$0xff]  ;;  %v1355_v61 = vld [vmem:[#allocation5 + $0x10] sm:$0xff] }
 0x3d4   : > { %v1762_v54 = vpop.eup %1761 }
 0x3d5   : > { %1369 = vperm.xlu1 %1741, %v1762_v54   ;;  %v1356_v2 = vld [vmem:[#allocation5 + $0x18] sm:$0xff] }
 0x3d8   : > { %v1764_v55 = vpop.eup %1763 }
 0x3d9   : > { %1374 = vperm.xlu0 %1742, %v1764_v55   ;;  %1308 = vperm.xlu1 %1741, %v1758_v9   ;;  %v1766_v56 = vpop.eup %1765 }
 0x3dd   : > { %1359 = vperm.xlu0 %1742, %v1766_v56  }
 0x450   : > { %v1365_v57 = vpop.permute.xlu0 %1364 }
 0x451   : > { %v1378_v59 = vmul.f32 %v1365_v57, %v1354_v58 }
 0x453   : > { %1382 = vrot.lane.b32.xlu1 %v1378_v59, %s1951_s24 }
 0x454   : > { %v1370_v60 = vpop.permute.xlu1 %1369 }
 0x455   : > { %v1379_v62 = vmul.f32 %v1370_v60, %v1355_v61 }
 0x457   : > { %1386 = vrot.lane.b32.xlu0 %v1379_v62, %s1952_s7 }
 0x458   : > { %v1375_v1 = vpop.permute.xlu0 %1374  ;;  %v1309_v3 = vpop.permute.xlu1 %1308 }
 0x459   : > { %v1380_v4 = vmul.f32 %v1375_v1, %v1356_v2  ;;  %v1326_v5 = vmul.f32 %v1309_v3, %v1302_v63 }
 0x45b   : > { %v1330_v6 = vadd.f32 %v1326_v5, %v1088_v31  ;;  %1390 = vrot.lane.b32.xlu1 %v1380_v4, %s1950_s18 }
 0x45c   : > { %v1360_v7 = vpop.permute.xlu0 %1359 }
 0x45d   : > { %1334 = vst.msk [vmem:[#allocation5] sm:$0xff] %vm293_vm0, %v1330_v6 }
 0x464   : > { %v1353_v8 = vld [vmem:[#allocation5] sm:$0xff] }
 0x465   : > { %v1377_v10 = vmul.f32 %v1360_v7, %v1353_v8 }
 0x4c5   : > { %v1383_v9 = vpop.permute.xlu1 %1382 }
 0x4c6   : > { %v1393_v12 = vsel %vm293_vm0, %v1377_v10, %v1383_v9 }
 0x4c9   : > { %v1387_v11 = vpop.permute.xlu0 %1386 }
 0x4ca   : > { %v1395_v13 = vsel %vm1394_vm4, %v1393_v12, %v1387_v11 }
 0x4cd   : > { %v1391_v14 = vpop.permute.xlu1 %1390 }
 0x4ce   : > { %v1397_v15 = vsel %vm1396_vm5, %v1395_v13, %v1391_v14 }
 0x4cf   : > { %1398 = vst [vmem:[%s286_s6] sm:$0xff] %v1397_v15 }
 0x4d0   : > { %1870 = shalt.err (!%p1867_p13)
}
 0x4d1   : > { %s1871_s21 = scalar_lea.hbm %s2333_s30, 128  ;;  %s1875_s16 = scalar_lea.hbm %s2385_s3, 256 }
 0x4d2   : > { %p1872_p11 = scmp.ne.s32.totalorder %s2333_s30, %s1871_s21  ;;  %p1876_p7 = scmp.lt.u32.totalorder %s2333_s30, %s2385_s3 }
 0x4d3   : > { %p1877_p3 = scmp.lt.u32.totalorder %s1875_s16, %s1871_s21  ;;  %p1879_p4 = scmp.lt.u32.totalorder %s1871_s21, %s2333_s30 }
 0x4d4   : > { %p1873_p2 = pnand %p1872_p11, %p2408_p10 }
 0x4d5   : > { %p1878_p0 = por %p1877_p3, %p1876_p7 }
 0x4d6   : > { %p1874_p5 = pneg %p1873_p2 }
 0x4d7   : > { %p1880_p12 = por %p1879_p4, %p1878_p0 }
 0x4d9   : > { %p1881_p1 = pnand %p1880_p12, %p1874_p5 }
 0x4db   : > { %1884 = shalt.err (!%p1881_p1)
}
 0x4dc   : > { %1667 = dma.vmem_to_hbm [thread:$0]  (%p2408_p10), %s2335_s9, 128, %s2333_s30, %s1400_s15  }
 0x4dd PF: > { %s1426_s19 = sand.u32 1, %s1923_s12   ;;  %p2409_p8 = scmp.ne.s32.totalorder %s2398_s27, 0 }
 0x4de   : > { %p2410_p9 = scmp.ge.s32.totalorder %s1943_s17, 2  ;;  %s1427_s18 = scalar_lea.sflag [#allocation8], %s1426_s19 }
 0x4e0   : > { %p1680_p6 = pnand %p2410_p9, %p2409_p8 }
 0x4e2   : > { %1918 = dma.done.wait (!%p1680_p6), %s1427_s18, 128  }
 0x4e3   : > { %1920 = vsyncadd (!%p1680_p6), %s1427_s18, 4294967168  ;;  %s22_s17 = sadd.s32 1, %s1943_s17   ;;  %s2411_s25 = sld [smem:[#allocation18_spill]] }
 0x4e4   : > { %p19_p13 = scmp.ge.s32.totalorder %s22_s17, 4   ;;  %s2412_s15 = sld [smem:[#allocation16_spill]] }
 0x4e5   : > { %s2413_s16 = sld [smem:[#allocation17_spill]]  ;;  %s2414_s12 = smov %s1927_s13 }
 0x4e6   : > { %s2415_s13 = smov %s1931_s14  ;;  %21 = sbr.rel (!%p19_p13) target bundleno = 10 (0xa), region = 112 }
 0x4e9   : > { %s2416_s14 = smov %s2411_s25 }
 0x4ed   :  { %1432 = vsyncpa [#allocation7], 1 }
 0x4ee   :  { %1434 = vsyncpa [#allocation7 + $0x1], 1 }
 0x4ef   :  { %1435 = vsyncpa [#allocation10], 1 }
 0x4f0   :  { %1437 = vsyncpa [#allocation10 + $0x1], 1 }
 0x4f1   :  { %1438 = vsyncpa [#allocation8], 1 }
 0x4f2   :  { %1440 = vsyncpa [#allocation8 + $0x1], 1 }

</bundles_post_ra>
